<compile_context>
chip_gen: v7x
topology: tpu7x:2x2x1
jax: 0.10.0
libtpu: 0.0.40
codegen_flags: <defaults>
</compile_context>

<pallas_src>
import jax
import jax.numpy as jnp
from jax.experimental import pallas as pl
from jax.experimental.pallas import tpu as pltpu


def make_positional_encoding(d_model: int, max_len: int = 5000) -> jnp.ndarray:
    """Deterministic buffer init, identical to the PyTorch __init__."""
    position = jnp.arange(max_len, dtype=jnp.float32)[:, None]            # (max_len, 1)
    div_term = jnp.exp(
        jnp.arange(0, d_model, 2, dtype=jnp.float32)
        * (-jnp.log(jnp.float32(10000.0)) / d_model)
    )                                                                      # (d_model//2,)
    pe = jnp.zeros((max_len, d_model), dtype=jnp.float32)
    pe = pe.at[:, 0::2].set(jnp.sin(position * div_term))
    pe = pe.at[:, 1::2].set(jnp.cos(position * div_term))
    return pe[:, None, :]                                                  # (max_len, 1, d_model)


def _add_pe_kernel(x_ref, pe_ref, o_ref):
    # x_ref/o_ref: (ts, tb, D) tile; pe_ref: (ts, 1, D) f32 tile.
    # Size-1 sublane broadcast over the batch axis.  Add in f32 (torch-parity
    # precision for bf16 inputs; no-op casts for f32), cast once on store.
    o_ref[...] = (x_ref[...].astype(jnp.float32) + pe_ref[...]).astype(o_ref.dtype)


_MIN_SUBLANE = {1: 32, 2: 16, 4: 8, 8: 8}   # itemsize -> min sublane tile


def _round_up(n: int, m: int) -> int:
    return ((n + m - 1) // m) * m


def _vmem_budget_and_limit() -> tuple[int, int]:
    """Per-generation (working-set budget, vmem_limit_bytes)."""
    vmem = 64 * 1024 * 1024                      # conservative default (v7x per-TC)
    try:
        info = pltpu.get_tpu_info()
        cap = getattr(info, "vmem_capacity_bytes", None)
        if cap:
            vmem = int(cap)
    except Exception:
        pass
    if vmem >= 100 * 1024 * 1024:                # v5e / v6e: 128 MiB VMEM
        return 40 * 1024 * 1024, 96 * 1024 * 1024
    return 20 * 1024 * 1024, 48 * 1024 * 1024    # v7x: 64 MiB per TC


def _pick_tiles(seq_len: int, batch: int, d_model: int, itemsize: int,
                budget: int) -> tuple[int, int]:
    """Pick (seq_tile, batch_tile) so the double-buffered working set fits `budget`."""
    sub = _MIN_SUBLANE.get(itemsize, 8)
    lane_d = _round_up(d_model, 128)
    pe_row = 8 * lane_d * 4                      # (ts,1,D) f32 block: 1 sublane pads to 8

    def step_row_bytes(tb: int) -> int:          # x + out + pe bytes, per seq row
        return 2 * _round_up(tb, sub) * lane_d * itemsize + pe_row

    ts_max = budget // (2 * step_row_bytes(batch))   # 2-deep double buffering
    if ts_max >= 8:
        tb = batch
        ts = (ts_max // 8) * 8
    else:
        # Batch-tiling fallback: one 8-row full-batch block already busts the budget.
        ts = 8
        per_row_budget = budget // (2 * 8)
        tb_pad = max(0, per_row_budget - pe_row) // (2 * lane_d * itemsize)
        tb = max(sub, (tb_pad // sub) * sub)     # multiple of the sublane tile
        tb = min(tb, batch)

    ts = min(ts, _round_up(seq_len, 8))
    if seq_len > 8:
        # Keep >= 2 seq tiles so v7x's 2 TensorCores can split the work.
        ts = min(ts, _round_up(pl.cdiv(seq_len, 2), 8))
    return max(ts, 8), tb


def positional_encoding_forward(
    x: jnp.ndarray,
    pe: jnp.ndarray,
    *,
    seq_tile: int | None = None,
    batch_tile: int | None = None,
    donate_x: bool = False,
) -> jnp.ndarray:
    """x: (seq_len, batch, d_model); pe: (max_len, 1, d_model) f32 buffer."""
    seq_len, batch, d_model = x.shape
    itemsize = jnp.dtype(x.dtype).itemsize
    budget, vmem_limit = _vmem_budget_and_limit()

    ts, tb = _pick_tiles(seq_len, batch, d_model, itemsize, budget)
    if seq_tile is not None:
        ts = min(seq_tile, _round_up(seq_len, 8))
    if batch_tile is not None:
        tb = min(batch_tile, batch)

    num_s = pl.cdiv(seq_len, ts)
    num_b = pl.cdiv(batch, tb)

    cost = pl.CostEstimate(
        flops=seq_len * batch * d_model,
        transcendentals=0,
        bytes_accessed=2 * x.size * itemsize + seq_len * d_model * 4,
    )

    extra = {"input_output_aliases": {0: 0}} if donate_x else {}

    return pl.pallas_call(
        _add_pe_kernel,
        out_shape=jax.ShapeDtypeStruct((seq_len, batch, d_model), x.dtype),
        grid_spec=pltpu.PrefetchScalarGridSpec(
            num_scalar_prefetch=0,
            grid=(num_s, num_b),
            in_specs=[
                pl.BlockSpec((ts, tb, d_model), lambda i, j: (i, j, 0)),
                pl.BlockSpec((ts, 1, d_model), lambda i, j: (i, 0, 0)),
            ],
            out_specs=pl.BlockSpec((ts, tb, d_model), lambda i, j: (i, j, 0)),
        ),
        compiler_params=pltpu.CompilerParams(
            # Independent tiles -> shard across TensorCores on v7x.
            dimension_semantics=("parallel", "parallel"),
            vmem_limit_bytes=vmem_limit,
        ),
        cost_estimate=cost,
        **extra,
    )(x, pe)


if __name__ == "__main__":
    key = jax.random.PRNGKey(0)

    # Case 1: small shapes implied by the module (seq-first layout).
    s1, b1, d1 = 8, 2, 32
    x1 = jax.random.normal(key, (s1, b1, d1), dtype=jnp.float32)
    pe1 = make_positional_encoding(d1, max_len=64)
    out1 = jax.block_until_ready(positional_encoding_forward(x1, pe1))
    ref1 = x1 + pe1[:s1]
    assert out1.shape == (s1, b1, d1)
    assert jnp.allclose(out1, ref1, atol=1e-6), "mismatch vs reference (case 1)"

    # Case 2: multi-block pipelined path, lane-dense D, non-divisible seq_len
    # (exercises the partial last seq tile).
    s2, b2, d2 = 20, 2, 128
    x2 = jax.random.normal(jax.random.PRNGKey(0), (s2, b2, d2), dtype=jnp.float32)
    pe2 = make_positional_encoding(d2, max_len=64)
    out2 = jax.block_until_ready(positional_encoding_forward(x2, pe2, seq_tile=8))
    ref2 = x2 + pe2[:s2]
    assert jnp.allclose(out2, ref2, atol=1e-6), "mismatch vs reference (case 2)"

    # Case 3: batch-tiling fallback path (2-D grid over seq and batch).
    s3, b3, d3 = 16, 16, 128
    x3 = jax.random.normal(jax.random.PRNGKey(0), (s3, b3, d3), dtype=jnp.float32)
    pe3 = make_positional_encoding(d3, max_len=64)
    out3 = jax.block_until_ready(
        positional_encoding_forward(x3, pe3, seq_tile=8, batch_tile=8))
    ref3 = x3 + pe3[:s3]
    assert jnp.allclose(out3, ref3, atol=1e-6), "mismatch vs reference (case 3)"

    # Case 4: bf16 input — add performed in f32 inside the kernel, output keeps x.dtype.
    x4 = jax.random.normal(jax.random.PRNGKey(0), (s1, b1, d1), dtype=jnp.bfloat16)
    out4 = jax.block_until_ready(positional_encoding_forward(x4, pe1))
    ref4 = (x4.astype(jnp.float32) + pe1[:s1]).astype(jnp.bfloat16)
    assert jnp.allclose(out4.astype(jnp.float32), ref4.astype(jnp.float32),
                        atol=1e-2), "mismatch vs reference (case 4)"

    print("KERNEL_OK")
</pallas_src>

<mosaic_0001>
module attributes {stable_mosaic.version = 11 : i64} {
  func.func @_add_pe_kernel(%arg0: i32, %arg1: i32, %arg2: memref<8x2x32xf32, #tpu.memory_space<vmem>>, %arg3: memref<8x1x32xf32, #tpu.memory_space<vmem>>, %arg4: memref<8x2x32xf32, #tpu.memory_space<vmem>>) attributes {dimension_semantics = [#tpu.dimension_semantics<parallel>, #tpu.dimension_semantics<parallel>], iteration_bounds = array<i64: 1, 1>, scalar_prefetch = 0 : i64, scratch_operands = 0 : i64, tpu.core_type = #tpu.core_type<tc>, window_params = [{transform_indices = @transform_0, window_bounds = array<i64: 8, 2, 32>}, {transform_indices = @transform_1, window_bounds = array<i64: 8, 1, 32>}, {transform_indices = @transform_2, window_bounds = array<i64: 8, 2, 32>}]} {
    %c0 = arith.constant 0 : index
    %c0_0 = arith.constant 0 : index
    %c0_1 = arith.constant 0 : index
    %0 = vector.load %arg2[%c0, %c0_0, %c0_1] : memref<8x2x32xf32, #tpu.memory_space<vmem>>, vector<8x2x32xf32>
    %c0_2 = arith.constant 0 : index
    %c0_3 = arith.constant 0 : index
    %c0_4 = arith.constant 0 : index
    %1 = vector.load %arg3[%c0_2, %c0_3, %c0_4] : memref<8x1x32xf32, #tpu.memory_space<vmem>>, vector<8x1x32xf32>
    %2 = vector.broadcast %1 : vector<8x1x32xf32> to vector<8x2x32xf32>
    %3 = arith.addf %0, %2 : vector<8x2x32xf32>
    %c0_5 = arith.constant 0 : index
    %c0_6 = arith.constant 0 : index
    %c0_7 = arith.constant 0 : index
    %4 = vector.load %arg4[%c0_5, %c0_6, %c0_7] : memref<8x2x32xf32, #tpu.memory_space<vmem>>, vector<8x2x32xf32>
    tpu.vector_store %arg4[%c0_5, %c0_6, %c0_7], %3 {strides = array<i32>} : memref<8x2x32xf32, #tpu.memory_space<vmem>>, vector<8x2x32xf32>,
    return
  }
  func.func @transform_0(%arg0: i32, %arg1: i32) -> (i32, i32, i32) {
    %c0_i32 = arith.constant 0 : i32
    %c0_i32_0 = arith.constant 0 : i32
    return %arg0, %arg1, %c0_i32 : i32, i32, i32
  }
  func.func @transform_1(%arg0: i32, %arg1: i32) -> (i32, i32, i32) {
    %c0_i32 = arith.constant 0 : i32
    %c0_i32_0 = arith.constant 0 : i32
    %c0_i32_1 = arith.constant 0 : i32
    return %arg0, %c0_i32, %c0_i32_0 : i32, i32, i32
  }
  func.func @transform_2(%arg0: i32, %arg1: i32) -> (i32, i32, i32) {
    %c0_i32 = arith.constant 0 : i32
    %c0_i32_0 = arith.constant 0 : i32
    return %arg0, %arg1, %c0_i32 : i32, i32, i32
  }
}

</mosaic_0001>

<bundles_post_ra>
// kernel: tpu_custom_call.1
= control target key start
LH: loop header
LB: loop body
LE: loop exit
PB: predicated region body
PF: predicated region fallthrough
CT: control target
= control target key end

     0   :  { %vm84_vm0 = vcmask 254976   ;;  %s230_s0 = inlined_call_operand.vmem [shape: f32[8,2,32], index: 0, kind: input, shape index: {}]   ;;  %s231_s1 = inlined_call_operand.vmem [shape: f32[64,1,32], index: 1, kind: input, shape index: {}]   ;;  %s232_s2 = inlined_call_operand.hbm [shape: f32[8,2,32], index: 2, kind: output, shape index: {}]  }
   0x1   :  { %v12_v0 = vld [vmem:[%s230_s0] sm:$0x3]  ;;  %v13_v3 = vld [vmem:[%s230_s0 + $0x2] sm:$0x3]  ;;  %v14_v5 = vld [vmem:[%s230_s0 + $0x4] sm:$0x3] }
   0x2   :  { %v109_v1 = vld [vmem:[%s231_s1] ss:$0 sm:$0xff]  ;;  %v110_v4 = vld [vmem:[%s231_s1 + $0x1] ss:$0 sm:$0xff]  ;;  %v111_v7 = vld [vmem:[%s231_s1 + $0x2] ss:$0 sm:$0xff] }
   0x3   :  { %v76_v2 = vadd.f32 %v109_v1, %v12_v0  ;;  %v77_v6 = vadd.f32 %v110_v4, %v13_v3  ;;  %v15_v8 = vld [vmem:[%s230_s0 + $0x6] sm:$0x3]  ;;  %v112_v9 = vld [vmem:[%s231_s1 + $0x3] ss:$0 sm:$0xff]  ;;  %v78_v10 = vadd.f32 %v111_v7, %v14_v5  ;;  %v16_v12 = vld [vmem:[%s230_s0 + $0x8] sm:$0x3] }
   0x4   :  { %v79_v11 = vadd.f32 %v112_v9, %v15_v8  ;;  %v113_v13 = vld [vmem:[%s231_s1 + $0x4] ss:$0 sm:$0xff]  ;;  %v17_v14 = vld [vmem:[%s230_s0 + $0xa] sm:$0x3]  ;;  %v114_v16 = vld [vmem:[%s231_s1 + $0x5] ss:$0 sm:$0xff] }
   0x5   :  { %85 = vst.msk [vmem:[#allocation2] sm:$0x3] %vm84_vm0, %v76_v2  ;;  %86 = vst.msk [vmem:[#allocation2 + $0x2] sm:$0x3] %vm84_vm0, %v77_v6  ;;  %v80_v15 = vadd.f32 %v113_v13, %v16_v12  ;;  %v18_v17 = vld [vmem:[%s230_s0 + $0xc] sm:$0x3]  ;;  %v81_v19 = vadd.f32 %v114_v16, %v17_v14 }
   0x6   :  { %v115_v18 = vld [vmem:[%s231_s1 + $0x6] ss:$0 sm:$0xff]  ;;  %87 = vst.msk [vmem:[#allocation2 + $0x4] sm:$0x3] %vm84_vm0, %v78_v10  ;;  %88 = vst.msk [vmem:[#allocation2 + $0x6] sm:$0x3] %vm84_vm0, %v79_v11 }
   0x7   :  { %v82_v20 = vadd.f32 %v115_v18, %v18_v17  ;;  %v19_v21 = vld [vmem:[%s230_s0 + $0xe] sm:$0x3]  ;;  %v116_v22 = vld [vmem:[%s231_s1 + $0x7] ss:$0 sm:$0xff] }
   0x8   :  { %7 = vsyncpa [#allocation3], 0  ;;  %89 = vst.msk [vmem:[#allocation2 + $0x8] sm:$0x3] %vm84_vm0, %v80_v15  ;;  %v83_v23 = vadd.f32 %v116_v22, %v19_v21  ;;  %s144_s13 = smov [#allocation2]  }
   0x9   :  { %s98_s14 = sshll.u32 %s144_s13, 4  ;;  %90 = vst.msk [vmem:[#allocation2 + $0xa] sm:$0x3] %vm84_vm0, %v81_v19  ;;  %91 = vst.msk [vmem:[#allocation2 + $0xc] sm:$0x3] %vm84_vm0, %v82_v20  ;;  %s99_s14 = int_to_ptr.vmem [resolvable:$true] %s98_s14 }
   0xa   :  { %92 = vst.msk [vmem:[#allocation2 + $0xe] sm:$0x3] %vm84_vm0, %v83_v23  ;;  %s120_s15 = scalar_lea.vmem %s99_s14, 256  ;;  %p125_p1 = scmp.lt.s32.totalorder %s99_s14, %s99_s14 }
   0xb   :  { %p121_p0 = scmp.ne.s32.totalorder %s99_s14, %s120_s15  ;;  %p126_p2 = scmp.lt.s32.totalorder %s120_s15, %s120_s15 }
   0xd   :  { %p127_p3 = por %p126_p2, %p125_p1 }
   0xf   :  { %p128_p4 = pnand %p127_p3, %p121_p0 }
  0x11   :  { %131 = shalt.err (!%p128_p4)
}
  0x12   :  { %s132_s16 = scalar_lea.hbm %s232_s2, 256 }
  0x13   :  { %p133_p5 = scmp.ne.s32.totalorder %s232_s2, %s132_s16  ;;  %p136_p6 = scmp.lt.u32.totalorder %s132_s16, %s232_s2 }
  0x15   :  { %p138_p7 = pnand %p136_p6, %p133_p5 }
  0x17   :  { %141 = shalt.err (!%p138_p7)
}
  0x18   :  { %s145_s21 = smov 32   ;;  %s146_s22 = smov 2  }
  0x19   :  { %104 = dma.vmem_to_hbm [thread:$0]  %s99_s14, 256, %s232_s2, [#allocation3], %s145_s21, %s145_s21, %s146_s22  }
  0x1a   :  { %142 = dma.done.wait [#allocation3], 256  }
  0x1b   :  { %143 = vsyncadd [#allocation3], 4294967040 }
  0x1c   :  { %108 = vsyncpa [#allocation3], 1 }

</bundles_post_ra>
